<compile_context>
chip_gen: v5e
topology: v5e:2x2
jax: 0.10.0
libtpu: 0.0.40
codegen_flags: <defaults>
</compile_context>

<pallas_src>
import jax
import jax.numpy as jnp
from jax.experimental import pallas as pl
from jax.experimental.pallas import tpu as pltpu


def mlp_kernel(x_ref, w1_ref, b1_ref, w2_ref, b2_ref, w3_ref, b3_ref, o_ref):
    # Layer 1: Linear(input_size, 32) + ReLU   (f32 in, f32 accumulate)
    h1 = jnp.dot(x_ref[...], w1_ref[...], preferred_element_type=jnp.float32)
    h1 = jnp.maximum(h1 + b1_ref[...], 0.0)
    # Layer 2: Linear(32, 16) + ReLU
    h2 = jnp.dot(h1, w2_ref[...], preferred_element_type=jnp.float32)
    h2 = jnp.maximum(h2 + b2_ref[...], 0.0)
    # Layer 3: Linear(16, num_classes)  (no activation, matches PyTorch module)
    out = jnp.dot(h2, w3_ref[...], preferred_element_type=jnp.float32)
    o_ref[...] = out + b3_ref[...]


def _round_up(n, m):
    return ((n + m - 1) // m) * m


def _choose_block_batch(batch, max_block):
    """Batch tile: multiple of 8 sublanes, >=2 grid steps when batch > 8
    (keeps both v7x TensorCores busy), capped by max_block for VMEM safety."""
    if batch <= 8:
        return 8
    return max(8, min(max_block, _round_up(pl.cdiv(batch, 2), 8)))


def gesture_classifier_forward(x, params, max_block_batch=2048):
    """x: [B, input_size] float32; params: dict of f32 weights/biases."""
    batch, input_size = x.shape
    h1_dim = params["w1"].shape[1]
    h2_dim = params["w2"].shape[1]
    num_classes = params["w3"].shape[1]

    tb = _choose_block_batch(batch, max_block_batch)
    grid = (pl.cdiv(batch, tb),)

    flops = 2 * batch * (input_size * h1_dim + h1_dim * h2_dim
                         + h2_dim * num_classes)
    param_bytes = 4 * (input_size * h1_dim + h1_dim
                       + h1_dim * h2_dim + h2_dim
                       + h2_dim * num_classes + num_classes)
    bytes_accessed = batch * 4 * (input_size + num_classes) + param_bytes

    return pl.pallas_call(
        mlp_kernel,
        out_shape=jax.ShapeDtypeStruct((batch, num_classes), jnp.float32),
        grid=grid,
        in_specs=[
            # Streamed per-block input (partial trailing block is masked).
            pl.BlockSpec((tb, input_size), lambda i: (i, 0)),
            # Resident weights / biases (same block for every grid step).
            pl.BlockSpec((input_size, h1_dim), lambda i: (0, 0)),
            pl.BlockSpec((1, h1_dim), lambda i: (0, 0)),
            pl.BlockSpec((h1_dim, h2_dim), lambda i: (0, 0)),
            pl.BlockSpec((1, h2_dim), lambda i: (0, 0)),
            pl.BlockSpec((h2_dim, num_classes), lambda i: (0, 0)),
            pl.BlockSpec((1, num_classes), lambda i: (0, 0)),
        ],
        out_specs=pl.BlockSpec((tb, num_classes), lambda i: (i, 0)),
        compiler_params=pltpu.CompilerParams(
            dimension_semantics=("parallel",),
            vmem_limit_bytes=32 * 1024 * 1024),
        cost_estimate=pl.CostEstimate(
            flops=flops, transcendentals=0, bytes_accessed=bytes_accessed),
    )(x, params["w1"], params["b1"], params["w2"], params["b2"],
      params["w3"], params["b3"])


def init_params(key, input_size=10, num_classes=4):
    """Deterministic init mimicking PyTorch's default uniform(-1/sqrt(fan_in))."""
    dims = [(input_size, 32), (32, 16), (16, num_classes)]
    params = {}
    for i, (fan_in, fan_out) in enumerate(dims, start=1):
        key, kw, kb = jax.random.split(key, 3)
        bound = 1.0 / jnp.sqrt(fan_in)
        params[f"w{i}"] = jax.random.uniform(
            kw, (fan_in, fan_out), jnp.float32, -bound, bound)
        params[f"b{i}"] = jax.random.uniform(
            kb, (1, fan_out), jnp.float32, -bound, bound)
    return params


def reference_forward(x, params):
    """Full-precision reference (PyTorch-module semantics)."""
    h1 = jnp.maximum(x @ params["w1"] + params["b1"], 0.0)
    h2 = jnp.maximum(h1 @ params["w2"] + params["b2"], 0.0)
    return h2 @ params["w3"] + params["b3"]


if __name__ == "__main__":
    key = jax.random.PRNGKey(0)
    key, kx, kx2 = jax.random.split(key, 3)

    input_size = 10
    num_classes = 4
    params = init_params(key, input_size=input_size, num_classes=num_classes)

    # Small canonical test: batch=2 (single, partially-masked block).
    batch = 2
    x = jax.random.normal(kx, (batch, input_size), dtype=jnp.float32)
    out = jax.block_until_ready(gesture_classifier_forward(x, params))
    assert out.shape == (batch, num_classes)
    assert jnp.allclose(out, reference_forward(x, params),
                        atol=3e-2, rtol=3e-2)

    # Non-multiple-of-8 batch: 2-step grid with a masked partial trailing block.
    batch2 = 50
    x2 = jax.random.normal(kx2, (batch2, input_size), dtype=jnp.float32)
    out2 = jax.block_until_ready(gesture_classifier_forward(x2, params))
    assert out2.shape == (batch2, num_classes)
    assert jnp.allclose(out2, reference_forward(x2, params),
                        atol=3e-2, rtol=3e-2)

    print("KERNEL_OK")
</pallas_src>

<mosaic_0001>
module attributes {stable_mosaic.version = 11 : i64} {
  func.func @mlp_kernel(%arg0: i32, %arg1: memref<8x10xf32, #tpu.memory_space<vmem>>, %arg2: memref<10x32xf32, #tpu.memory_space<vmem>>, %arg3: memref<1x32xf32, #tpu.memory_space<vmem>>, %arg4: memref<32x16xf32, #tpu.memory_space<vmem>>, %arg5: memref<1x16xf32, #tpu.memory_space<vmem>>, %arg6: memref<16x4xf32, #tpu.memory_space<vmem>>, %arg7: memref<1x4xf32, #tpu.memory_space<vmem>>, %arg8: memref<8x4xf32, #tpu.memory_space<vmem>>) attributes {dimension_semantics = [#tpu.dimension_semantics<parallel>], iteration_bounds = array<i64: 1>, scalar_prefetch = 0 : i64, scratch_operands = 0 : i64, tpu.core_type = #tpu.core_type<tc>, window_params = [{transform_indices = @transform_0, window_bounds = array<i64: 8, 10>}, {pipeline_mode = #tpu.pipeline_mode<synchronous>, transform_indices = @transform_1, window_bounds = array<i64: 10, 32>}, {pipeline_mode = #tpu.pipeline_mode<synchronous>, transform_indices = @transform_2, window_bounds = array<i64: 1, 32>}, {pipeline_mode = #tpu.pipeline_mode<synchronous>, transform_indices = @transform_3, window_bounds = array<i64: 32, 16>}, {pipeline_mode = #tpu.pipeline_mode<synchronous>, transform_indices = @transform_4, window_bounds = array<i64: 1, 16>}, {pipeline_mode = #tpu.pipeline_mode<synchronous>, transform_indices = @transform_5, window_bounds = array<i64: 16, 4>}, {pipeline_mode = #tpu.pipeline_mode<synchronous>, transform_indices = @transform_6, window_bounds = array<i64: 1, 4>}, {transform_indices = @transform_7, window_bounds = array<i64: 8, 4>}]} {
    %c0 = arith.constant 0 : index
    %c0_0 = arith.constant 0 : index
    %0 = vector.load %arg1[%c0, %c0_0] : memref<8x10xf32, #tpu.memory_space<vmem>>, vector<8x10xf32>
    %c0_1 = arith.constant 0 : index
    %c0_2 = arith.constant 0 : index
    %1 = vector.load %arg2[%c0_1, %c0_2] : memref<10x32xf32, #tpu.memory_space<vmem>>, vector<10x32xf32>
    %cst = arith.constant dense<0.000000e+00> : vector<8x32xf32>
    %2 = tpu.matmul %0, %1, %cst {dimension_numbers = #tpu.dot_dimension_numbers<[1], [0], [0], [1], [0, 0, 1, 1], [], []>} : vector<8x10xf32>, vector<10x32xf32>, vector<8x32xf32> -> vector<8x32xf32>
    %c0_3 = arith.constant 0 : index
    %c0_4 = arith.constant 0 : index
    %3 = vector.load %arg3[%c0_3, %c0_4] : memref<1x32xf32, #tpu.memory_space<vmem>>, vector<1x32xf32>
    %4 = vector.broadcast %3 : vector<1x32xf32> to vector<8x32xf32>
    %5 = arith.addf %2, %4 : vector<8x32xf32>
    %cst_5 = arith.constant 0.000000e+00 : f32
    %6 = vector.broadcast %cst_5 : f32 to vector<8x32xf32>
    %7 = arith.maximumf %5, %6 : vector<8x32xf32>
    %c0_6 = arith.constant 0 : index
    %c0_7 = arith.constant 0 : index
    %8 = vector.load %arg4[%c0_6, %c0_7] : memref<32x16xf32, #tpu.memory_space<vmem>>, vector<32x16xf32>
    %cst_8 = arith.constant dense<0.000000e+00> : vector<8x16xf32>
    %9 = tpu.matmul %7, %8, %cst_8 {dimension_numbers = #tpu.dot_dimension_numbers<[1], [0], [0], [1], [0, 0, 1, 1], [], []>} : vector<8x32xf32>, vector<32x16xf32>, vector<8x16xf32> -> vector<8x16xf32>
    %c0_9 = arith.constant 0 : index
    %c0_10 = arith.constant 0 : index
    %10 = vector.load %arg5[%c0_9, %c0_10] : memref<1x16xf32, #tpu.memory_space<vmem>>, vector<1x16xf32>
    %11 = vector.broadcast %10 : vector<1x16xf32> to vector<8x16xf32>
    %12 = arith.addf %9, %11 : vector<8x16xf32>
    %cst_11 = arith.constant 0.000000e+00 : f32
    %13 = vector.broadcast %cst_11 : f32 to vector<8x16xf32>
    %14 = arith.maximumf %12, %13 : vector<8x16xf32>
    %c0_12 = arith.constant 0 : index
    %c0_13 = arith.constant 0 : index
    %15 = vector.load %arg6[%c0_12, %c0_13] : memref<16x4xf32, #tpu.memory_space<vmem>>, vector<16x4xf32>
    %cst_14 = arith.constant dense<0.000000e+00> : vector<8x4xf32>
    %16 = tpu.matmul %14, %15, %cst_14 {dimension_numbers = #tpu.dot_dimension_numbers<[1], [0], [0], [1], [0, 0, 1, 1], [], []>} : vector<8x16xf32>, vector<16x4xf32>, vector<8x4xf32> -> vector<8x4xf32>
    %c0_15 = arith.constant 0 : index
    %c0_16 = arith.constant 0 : index
    %17 = vector.load %arg7[%c0_15, %c0_16] : memref<1x4xf32, #tpu.memory_space<vmem>>, vector<1x4xf32>
    %18 = vector.broadcast %17 : vector<1x4xf32> to vector<8x4xf32>
    %19 = arith.addf %16, %18 : vector<8x4xf32>
    %c0_17 = arith.constant 0 : index
    %c0_18 = arith.constant 0 : index
    %20 = vector.load %arg8[%c0_17, %c0_18] : memref<8x4xf32, #tpu.memory_space<vmem>>, vector<8x4xf32>
    tpu.vector_store %arg8[%c0_17, %c0_18], %19 {strides = array<i32>} : memref<8x4xf32, #tpu.memory_space<vmem>>, vector<8x4xf32>,
    return
  }
  func.func @transform_0(%arg0: i32) -> (i32, i32) {
    %c0_i32 = arith.constant 0 : i32
    %c0_i32_0 = arith.constant 0 : i32
    return %arg0, %c0_i32 : i32, i32
  }
  func.func @transform_1(%arg0: i32) -> (i32, i32) {
    %c0_i32 = arith.constant 0 : i32
    %c0_i32_0 = arith.constant 0 : i32
    %c0_i32_1 = arith.constant 0 : i32
    return %c0_i32, %c0_i32_0 : i32, i32
  }
  func.func @transform_2(%arg0: i32) -> (i32, i32) {
    %c0_i32 = arith.constant 0 : i32
    %c0_i32_0 = arith.constant 0 : i32
    %c0_i32_1 = arith.constant 0 : i32
    return %c0_i32, %c0_i32_0 : i32, i32
  }
  func.func @transform_3(%arg0: i32) -> (i32, i32) {
    %c0_i32 = arith.constant 0 : i32
    %c0_i32_0 = arith.constant 0 : i32
    %c0_i32_1 = arith.constant 0 : i32
    return %c0_i32, %c0_i32_0 : i32, i32
  }
  func.func @transform_4(%arg0: i32) -> (i32, i32) {
    %c0_i32 = arith.constant 0 : i32
    %c0_i32_0 = arith.constant 0 : i32
    %c0_i32_1 = arith.constant 0 : i32
    return %c0_i32, %c0_i32_0 : i32, i32
  }
  func.func @transform_5(%arg0: i32) -> (i32, i32) {
    %c0_i32 = arith.constant 0 : i32
    %c0_i32_0 = arith.constant 0 : i32
    %c0_i32_1 = arith.constant 0 : i32
    return %c0_i32, %c0_i32_0 : i32, i32
  }
  func.func @transform_6(%arg0: i32) -> (i32, i32) {
    %c0_i32 = arith.constant 0 : i32
    %c0_i32_0 = arith.constant 0 : i32
    %c0_i32_1 = arith.constant 0 : i32
    return %c0_i32, %c0_i32_0 : i32, i32
  }
  func.func @transform_7(%arg0: i32) -> (i32, i32) {
    %c0_i32 = arith.constant 0 : i32
    %c0_i32_0 = arith.constant 0 : i32
    return %arg0, %c0_i32 : i32, i32
  }
}

</mosaic_0001>

<bundles_post_ra>
// kernel: tpu_custom_call.1
= control target key start
LH: loop header
LB: loop body
LE: loop exit
PB: predicated region body
PF: predicated region fallthrough
CT: control target
= control target key end

     0   :  { %12 = vsyncpa [#allocation3], 0  ;;  %vm38_vm0 = vcmask 1041408   ;;  %vm34_vm1 = vcmask 80896   ;;  %vm71_vm2 = vcmask 261120   ;;  %vm102_vm3 = vcmask 130048   ;;  %s264_s0 = inlined_call_operand.vmem [shape: f32[2,10], index: 0, kind: input, shape index: {}]   ;;  %s265_s1 = inlined_call_operand.vmem [shape: f32[10,32], index: 1, kind: input, shape index: {}]   ;;  %s266_s2 = inlined_call_operand.vmem [shape: f32[1,32], index: 2, kind: input, shape index: {}]   ;;  %s267_s3 = inlined_call_operand.vmem [shape: f32[32,16], index: 3, kind: input, shape index: {}]   ;;  %s268_s4 = inlined_call_operand.vmem [shape: f32[1,16], index: 4, kind: input, shape index: {}]   ;;  %s269_s5 = inlined_call_operand.vmem [shape: f32[16,4], index: 5, kind: input, shape index: {}]   ;;  %s270_s6 = inlined_call_operand.vmem [shape: f32[1,4], index: 6, kind: input, shape index: {}]   ;;  %s271_s7 = inlined_call_operand.hbm [shape: f32[2,4], index: 7, kind: output, shape index: {}]  }
   0x1   :  { %v29_v0 = vld [vmem:[%s265_s1 + $0x8] sm:$0x3]  ;;  %v28_v1 = vld [vmem:[%s265_s1] sm:$0xff]  ;;  %v66_v3 = vld [vmem:[%s267_s3 + $0x18] sm:$0xff]  ;;  %vm126_vm4 = vcmask 31744  }
   0x2   :  { %146 = vmatpush.msk.msra.mxu0 %vm38_vm0, %v29_v0  ;;  %v27_v2 = vld [vmem:[%s264_s0] sm:$0xff]  ;;  %87 = vmatpush.msra.mxu1 %v66_v3  ;;  %v65_v4 = vld [vmem:[%s267_s3 + $0x10] sm:$0xff]  ;;  %v64_v5 = vld [vmem:[%s267_s3 + $0x8] sm:$0xff] }
   0x3   :  { %v63_v6 = vld [vmem:[%s267_s3] sm:$0xff]  ;;  %v97_v11 = vld [vmem:[%s269_s5 + $0x8] sm:$0xff] }
   0x4   :  { %57 = vmatpush.msra.mxu0 %v28_v1  ;;  %88 = vmatpush.msra.mxu1 %v65_v4  ;;  %v153_v7 = vld [vmem:[%s266_s2] ss:$0 sm:$0xff] }
   0x5   :  { %147 = vmatmul.msk.f32.vlgmr.msra.gmra.mxu0 %vm34_vm1, %v27_v2  ;;  %120 = vmatpush.msra.mxu2 %v97_v11  ;;  %v96_v12 = vld [vmem:[%s269_s5] sm:$0xff] }
   0x6   :  { %89 = vmatpush.msra.mxu1 %v64_v5  ;;  %v154_v13 = vld [vmem:[%s268_s4] ss:$0 sm:$0xff] }
   0x7   :  { %121 = vmatpush.msra.mxu2 %v96_v12  ;;  %v155_v17 = vld [vmem:[%s270_s6] ss:$0 sm:$0xff] }
   0x8   :  { %90 = vmatpush.msra.mxu1 %v63_v6 }
  0x82   :  { %v59_v8 = vpop.f32.mrf.mxu0 }
  0x83   :  { %v60_v9 = vadd.f32 %v153_v7, %v59_v8 }
  0x85   :  { %v62_v10 = vmax.f32 %v60_v9, 0.0 }
  0x87   :  { %148 = vmatmul.msk.f32.vlgmr.msra.gmra.mxu1 %vm71_vm2, %v62_v10 }
 0x104   :  { %v92_v14 = vpop.f32.mrf.mxu1 }
 0x105   :  { %v93_v15 = vadd.f32 %v154_v13, %v92_v14 }
 0x107   :  { %v95_v16 = vmax.f32 %v93_v15, 0.0 }
 0x109   :  { %149 = vmatmul.msk.f32.vlgmr.msra.gmra.mxu2 %vm102_vm3, %v95_v16 }
 0x18c   :  { %v123_v18 = vpop.f32.mrf.mxu2 }
 0x18d   :  { %v124_v19 = vadd.f32 %v155_v17, %v123_v18 }
 0x18f   :  { %127 = vst.msk [vmem:[#allocation2] sm:$0xff] %vm126_vm4, %v124_v19 }
 0x190   :  { %131 = vsyncadd [#allocation3], 96  ;;  %s134_s22 = sshll.u32 %s271_s7, 4  ;;  %s182_s23 = smov [#allocation2]   ;;  %s135_s22 = int_to_ptr.hbm [resolvable:$true] %s134_s22 }
 0x191   :  { %s132_s4 = sshll.u32 %s182_s23, 4  ;;  %s183_s24 = smov 32   ;;  %s133_s4 = int_to_ptr.vmem [resolvable:$true] %s132_s4 }
 0x192   :  { %s184_s25 = smov 2  }
 0x193   :  { %140 = dma.vmem_to_hbm [thread:$0]  %s133_s4, 32, %s135_s22, [#allocation3], %s183_s24, %s183_s24, %s184_s25  }
 0x194   :  { %180 = dma.done.wait [#allocation3], 128  }
 0x195   :  { %181 = vsyncadd [#allocation3], 4294967168 }
 0x196   :  { %145 = vsyncpa [#allocation3], 1 }

</bundles_post_ra>
